<compile_context>
chip_gen: v7x
topology: tpu7x:2x2x1
jax: 0.10.0
libtpu: 0.0.40
codegen_flags: <defaults>
</compile_context>

<pallas_src>
import functools

import jax
import jax.numpy as jnp
import numpy as np
from jax.experimental import pallas as pl
from jax.experimental.pallas import tpu as pltpu

EPS = 1e-5


@functools.partial(jax.jit, static_argnames=("padding", "dilation"))
def dilated_conv_block(x_nchw, w1, b1, w2, b2, gamma, beta, padding=1, dilation=2):
    """x_nchw: (N, Cin, H, W); w1: (Cmid, Cin, kh, kw) [OIHW]; w2: (Cout, Cmid, 1, 1).
    Returns conv(3x3 dilated, stride 1) -> conv(1x1) -> ReLU -> BatchNorm2d(train) in NCHW."""
    N, Cin, H, W = x_nchw.shape
    Cout = w2.shape[0]
    kh, kw = int(w1.shape[2]), int(w1.shape[3])

    Hp, Wp = H + 2 * padding, W + 2 * padding
    Ho = Hp - dilation * (kh - 1)
    Wo = Wp - dilation * (kw - 1)
    K = Wp * Cin                      # GEMM contraction width per kh tap
    NL = Wo * Cout                    # GEMM output width = lane dim of every store
    inv_count = 1.0 / float(N * Ho * Wo)

    # ---------------- wrapper: layout plumbing + one-off weight folding ----------------
    x = jnp.transpose(x_nchw, (0, 2, 3, 1)).astype(jnp.float32)            # NCHW -> NHWC
    xp = jnp.pad(x, ((0, 0), (padding, padding), (padding, padding), (0, 0)))
    xp = xp.reshape(N, Hp, K)                                              # channels folded into lanes

    w2m = w2[:, :, 0, 0].T.astype(jnp.float32)                             # (Cmid, Cout)
    wc = jnp.einsum("mckl,mo->klco", w1.astype(jnp.float32), w2m)          # (kh, kw, Cin, Cout)
    bc = b1.astype(jnp.float32) @ w2m + b2.astype(jnp.float32)             # (Cout,)

    # banded weight: out[h, wo*Cout+co] = sum_i Xp[h + i*dilation, :] @ Wband[i]
    sel = np.zeros((kw, Wp, Wo), np.float32)
    for j in range(kw):
        for wo in range(Wo):
            sel[j, wo + j * dilation, wo] = 1.0
    wband = jnp.einsum("jpw,ijco->ipcwo", jnp.asarray(sel), wc)            # (kh, Wp, Cin, Wo, Cout)
    wband = wband.reshape(kh, K, NL)
    bias_row = jnp.tile(bc, Wo).reshape(1, NL)                             # lane l -> bc[l % Cout]

    gamma_f = gamma.astype(jnp.float32)
    beta_f = beta.astype(jnp.float32)

    # shared fused-conv + bias + ReLU body: kh accumulated MXU matmuls (K=Wp*Cin each)
    def conv_relu(x_ref, w_ref, b_ref):
        acc = jnp.zeros((Ho, NL), jnp.float32)
        for i in range(kh):                                                # static unroll, kh = 3
            r0 = i * dilation
            acc = acc + jnp.dot(x_ref[0, r0:r0 + Ho, :], w_ref[i],
                                preferred_element_type=jnp.float32)
        return jnp.maximum(acc + b_ref[...], 0.0)

    # ---------------- pass 1: per-batch BN partial statistics (no y written to HBM) ----------
    def stats_kernel(x_ref, w_ref, b_ref, st_ref):
        y = conv_relu(x_ref, w_ref, b_ref)                                 # (Ho, Wo*Cout) f32
        st_ref[0, 0:1, :] = jnp.sum(y, axis=0, keepdims=True)
        st_ref[0, 1:2, :] = jnp.sum(y * y, axis=0, keepdims=True)

    part = pl.pallas_call(
        stats_kernel,
        out_shape=jax.ShapeDtypeStruct((N, 2, NL), jnp.float32),
        grid=(N,),
        in_specs=[
            pl.BlockSpec((1, Hp, K), lambda n: (n, 0, 0)),                 # per-batch activation
            pl.BlockSpec((kh, K, NL), lambda n: (0, 0, 0)),                # banded fused weight
            pl.BlockSpec((1, NL), lambda n: (0, 0)),                       # fused bias (lane-tiled)
        ],
        out_specs=pl.BlockSpec((1, 2, NL), lambda n: (n, 0, 0)),           # per-batch partial stats
        compiler_params=pltpu.CompilerParams(dimension_semantics=("parallel",)),
    )(xp, wband, bias_row)

    # tiny reduction + BN affine fold in plain JAX (a few KB of data)
    # NOTE: E[x^2] - mean^2 in f32; fine for ReLU-scale activations.
    tot = jnp.sum(part.reshape(N, 2, Wo, Cout), axis=(0, 2))               # (2, Cout)
    mean = tot[0] * inv_count
    var = tot[1] * inv_count - mean * mean                                 # biased batch variance
    scale = gamma_f * jax.lax.rsqrt(var + EPS)
    shift = beta_f - mean * scale
    ss = jnp.stack([jnp.tile(scale, Wo), jnp.tile(shift, Wo)])             # (2, Wo*Cout) lane-dense

    # ---------------- pass 2: recompute conv(+ReLU), apply folded BN, write final output -----
    def apply_kernel(x_ref, w_ref, b_ref, ss_ref, o_ref):
        y = conv_relu(x_ref, w_ref, b_ref)
        o_ref[0] = y * ss_ref[0:1, :] + ss_ref[1:2, :]

    out = pl.pallas_call(
        apply_kernel,
        out_shape=jax.ShapeDtypeStruct((N, Ho, NL), jnp.float32),
        grid=(N,),
        in_specs=[
            pl.BlockSpec((1, Hp, K), lambda n: (n, 0, 0)),
            pl.BlockSpec((kh, K, NL), lambda n: (0, 0, 0)),
            pl.BlockSpec((1, NL), lambda n: (0, 0)),
            pl.BlockSpec((2, NL), lambda n: (0, 0)),                       # [scale; shift]
        ],
        out_specs=pl.BlockSpec((1, Ho, NL), lambda n: (n, 0, 0)),          # valid pixels only
        compiler_params=pltpu.CompilerParams(dimension_semantics=("parallel",)),
    )(xp, wband, bias_row, ss)

    out = out.reshape(N, Ho, Wo, Cout)                                     # free (row-major)
    return jnp.transpose(out, (0, 3, 1, 2))                                # NHWC -> NCHW


def ref_forward(x, w1, b1, w2, b2, gamma, beta, padding=1, dilation=2):
    """Pure-JAX reference matching PyTorch semantics (BatchNorm2d in training mode)."""
    y = jax.lax.conv_general_dilated(
        x, w1, window_strides=(1, 1),
        padding=((padding, padding), (padding, padding)),
        rhs_dilation=(dilation, dilation),
        dimension_numbers=("NCHW", "OIHW", "NCHW"))
    y = y + b1[None, :, None, None]
    y = jax.lax.conv_general_dilated(
        y, w2, window_strides=(1, 1), padding=((0, 0), (0, 0)),
        dimension_numbers=("NCHW", "OIHW", "NCHW"))
    y = y + b2[None, :, None, None]
    y = jnp.maximum(y, 0.0)
    mean = jnp.mean(y, axis=(0, 2, 3), keepdims=True)
    var = jnp.mean((y - mean) ** 2, axis=(0, 2, 3), keepdims=True)
    yn = (y - mean) * jax.lax.rsqrt(var + EPS)
    return yn * gamma[None, :, None, None] + beta[None, :, None, None]


if __name__ == "__main__":
    # Small shapes consistent with the module: N=2, n_in=4, n_mid=8, n_out=8, 16x16 spatial
    N, Cin, H, W = 2, 4, 16, 16
    Cmid, Cout = 8, 8

    key = jax.random.PRNGKey(0)
    ks = jax.random.split(key, 7)
    x = jax.random.normal(ks[0], (N, Cin, H, W), dtype=jnp.float32)
    w1 = jax.random.normal(ks[1], (Cmid, Cin, 3, 3), dtype=jnp.float32) / np.sqrt(Cin * 9)
    b1 = jax.random.normal(ks[2], (Cmid,), dtype=jnp.float32) * 0.1
    w2 = jax.random.normal(ks[3], (Cout, Cmid, 1, 1), dtype=jnp.float32) / np.sqrt(Cmid)
    b2 = jax.random.normal(ks[4], (Cout,), dtype=jnp.float32) * 0.1
    gamma = 1.0 + 0.1 * jax.random.normal(ks[5], (Cout,), dtype=jnp.float32)
    beta = 0.1 * jax.random.normal(ks[6], (Cout,), dtype=jnp.float32)

    ref = jax.block_until_ready(ref_forward(x, w1, b1, w2, b2, gamma, beta))
    out = jax.block_until_ready(dilated_conv_block(x, w1, b1, w2, b2, gamma, beta))

    assert out.shape == ref.shape, (out.shape, ref.shape)
    np.testing.assert_allclose(np.asarray(out), np.asarray(ref), rtol=1e-4, atol=1e-4)
    print("KERNEL_OK")
</pallas_src>

<mosaic_0001>
module attributes {stable_mosaic.version = 11 : i64} {
  func.func @stats_kernel(%arg0: i32, %arg1: memref<1x18x72xf32, #tpu.memory_space<vmem>>, %arg2: memref<3x72x112xf32, #tpu.memory_space<vmem>>, %arg3: memref<1x112xf32, #tpu.memory_space<vmem>>, %arg4: memref<1x2x112xf32, #tpu.memory_space<vmem>>) attributes {dimension_semantics = [#tpu.dimension_semantics<parallel>], iteration_bounds = array<i64: 2>, scalar_prefetch = 0 : i64, scratch_operands = 0 : i64, tpu.core_type = #tpu.core_type<tc>, window_params = [{transform_indices = @transform_0, window_bounds = array<i64: 1, 18, 72>}, {pipeline_mode = #tpu.pipeline_mode<synchronous>, transform_indices = @transform_1, window_bounds = array<i64: 3, 72, 112>}, {pipeline_mode = #tpu.pipeline_mode<synchronous>, transform_indices = @transform_2, window_bounds = array<i64: 1, 112>}, {transform_indices = @transform_3, window_bounds = array<i64: 1, 2, 112>}]} {
    %cst = arith.constant 0.000000e+00 : f32
    %0 = vector.broadcast %cst : f32 to vector<14x112xf32>
    %c0 = arith.constant 0 : index
    %c0_0 = arith.constant 0 : index
    %c0_1 = arith.constant 0 : index
    %1 = vector.load %arg1[%c0, %c0_0, %c0_1] : memref<1x18x72xf32, #tpu.memory_space<vmem>>, vector<1x14x72xf32>
    %2 = vector.shape_cast %1 : vector<1x14x72xf32> to vector<14x72xf32>
    %c0_2 = arith.constant 0 : index
    %c0_3 = arith.constant 0 : index
    %c0_4 = arith.constant 0 : index
    %3 = vector.load %arg2[%c0_2, %c0_3, %c0_4] : memref<3x72x112xf32, #tpu.memory_space<vmem>>, vector<1x72x112xf32>
    %4 = vector.shape_cast %3 : vector<1x72x112xf32> to vector<72x112xf32>
    %cst_5 = arith.constant dense<0.000000e+00> : vector<14x112xf32>
    %5 = tpu.matmul %2, %4, %cst_5 {dimension_numbers = #tpu.dot_dimension_numbers<[1], [0], [0], [1], [0, 0, 1, 1], [], []>} : vector<14x72xf32>, vector<72x112xf32>, vector<14x112xf32> -> vector<14x112xf32>
    %6 = arith.addf %0, %5 : vector<14x112xf32>
    %c0_6 = arith.constant 0 : index
    %c2 = arith.constant 2 : index
    %c0_7 = arith.constant 0 : index
    %7 = vector.load %arg1[%c0_6, %c2, %c0_7] : memref<1x18x72xf32, #tpu.memory_space<vmem>>, vector<1x14x72xf32>
    %8 = vector.shape_cast %7 : vector<1x14x72xf32> to vector<14x72xf32>
    %c1 = arith.constant 1 : index
    %c0_8 = arith.constant 0 : index
    %c0_9 = arith.constant 0 : index
    %9 = vector.load %arg2[%c1, %c0_8, %c0_9] : memref<3x72x112xf32, #tpu.memory_space<vmem>>, vector<1x72x112xf32>
    %10 = vector.shape_cast %9 : vector<1x72x112xf32> to vector<72x112xf32>
    %cst_10 = arith.constant dense<0.000000e+00> : vector<14x112xf32>
    %11 = tpu.matmul %8, %10, %cst_10 {dimension_numbers = #tpu.dot_dimension_numbers<[1], [0], [0], [1], [0, 0, 1, 1], [], []>} : vector<14x72xf32>, vector<72x112xf32>, vector<14x112xf32> -> vector<14x112xf32>
    %12 = arith.addf %6, %11 : vector<14x112xf32>
    %c0_11 = arith.constant 0 : index
    %c4 = arith.constant 4 : index
    %c0_12 = arith.constant 0 : index
    %13 = vector.load %arg1[%c0_11, %c4, %c0_12] : memref<1x18x72xf32, #tpu.memory_space<vmem>>, vector<1x14x72xf32>
    %14 = vector.shape_cast %13 : vector<1x14x72xf32> to vector<14x72xf32>
    %c2_13 = arith.constant 2 : index
    %c0_14 = arith.constant 0 : index
    %c0_15 = arith.constant 0 : index
    %15 = vector.load %arg2[%c2_13, %c0_14, %c0_15] : memref<3x72x112xf32, #tpu.memory_space<vmem>>, vector<1x72x112xf32>
    %16 = vector.shape_cast %15 : vector<1x72x112xf32> to vector<72x112xf32>
    %cst_16 = arith.constant dense<0.000000e+00> : vector<14x112xf32>
    %17 = tpu.matmul %14, %16, %cst_16 {dimension_numbers = #tpu.dot_dimension_numbers<[1], [0], [0], [1], [0, 0, 1, 1], [], []>} : vector<14x72xf32>, vector<72x112xf32>, vector<14x112xf32> -> vector<14x112xf32>
    %18 = arith.addf %12, %17 : vector<14x112xf32>
    %c0_17 = arith.constant 0 : index
    %c0_18 = arith.constant 0 : index
    %19 = vector.load %arg3[%c0_17, %c0_18] : memref<1x112xf32, #tpu.memory_space<vmem>>, vector<1x112xf32>
    %20 = vector.broadcast %19 : vector<1x112xf32> to vector<14x112xf32>
    %21 = arith.addf %18, %20 : vector<14x112xf32>
    %cst_19 = arith.constant 0.000000e+00 : f32
    %22 = vector.broadcast %cst_19 : f32 to vector<14x112xf32>
    %23 = arith.maximumf %21, %22 : vector<14x112xf32>
    %cst_20 = arith.constant dense<0.000000e+00> : vector<112xf32>
    %24 = vector.multi_reduction <add>, %23, %cst_20 [0] : vector<14x112xf32> to vector<112xf32>
    %25 = vector.shape_cast %24 : vector<112xf32> to vector<1x112xf32>
    %c0_21 = arith.constant 0 : index
    %c0_22 = arith.constant 0 : index
    %c0_23 = arith.constant 0 : index
    %26 = vector.load %arg4[%c0_21, %c0_22, %c0_23] : memref<1x2x112xf32, #tpu.memory_space<vmem>>, vector<1x1x112xf32>
    %27 = vector.shape_cast %26 : vector<1x1x112xf32> to vector<1x112xf32>
    %28 = vector.shape_cast %25 : vector<1x112xf32> to vector<1x1x112xf32>
    tpu.vector_store %arg4[%c0_21, %c0_22, %c0_23], %28 {strides = array<i32>} : memref<1x2x112xf32, #tpu.memory_space<vmem>>, vector<1x1x112xf32>,
    %29 = arith.mulf %23, %23 : vector<14x112xf32>
    %cst_24 = arith.constant dense<0.000000e+00> : vector<112xf32>
    %30 = vector.multi_reduction <add>, %29, %cst_24 [0] : vector<14x112xf32> to vector<112xf32>
    %31 = vector.shape_cast %30 : vector<112xf32> to vector<1x112xf32>
    %c0_25 = arith.constant 0 : index
    %c1_26 = arith.constant 1 : index
    %c0_27 = arith.constant 0 : index
    %32 = vector.load %arg4[%c0_25, %c1_26, %c0_27] : memref<1x2x112xf32, #tpu.memory_space<vmem>>, vector<1x1x112xf32>
    %33 = vector.shape_cast %32 : vector<1x1x112xf32> to vector<1x112xf32>
    %34 = vector.shape_cast %31 : vector<1x112xf32> to vector<1x1x112xf32>
    tpu.vector_store %arg4[%c0_25, %c1_26, %c0_27], %34 {strides = array<i32>} : memref<1x2x112xf32, #tpu.memory_space<vmem>>, vector<1x1x112xf32>,
    return
  }
  func.func @transform_0(%arg0: i32) -> (i32, i32, i32) {
    %c0_i32 = arith.constant 0 : i32
    %c0_i32_0 = arith.constant 0 : i32
    %c0_i32_1 = arith.constant 0 : i32
    return %arg0, %c0_i32, %c0_i32_0 : i32, i32, i32
  }
  func.func @transform_1(%arg0: i32) -> (i32, i32, i32) {
    %c0_i32 = arith.constant 0 : i32
    %c0_i32_0 = arith.constant 0 : i32
    %c0_i32_1 = arith.constant 0 : i32
    %c0_i32_2 = arith.constant 0 : i32
    return %c0_i32, %c0_i32_0, %c0_i32_1 : i32, i32, i32
  }
  func.func @transform_2(%arg0: i32) -> (i32, i32) {
    %c0_i32 = arith.constant 0 : i32
    %c0_i32_0 = arith.constant 0 : i32
    %c0_i32_1 = arith.constant 0 : i32
    return %c0_i32, %c0_i32_0 : i32, i32
  }
  func.func @transform_3(%arg0: i32) -> (i32, i32, i32) {
    %c0_i32 = arith.constant 0 : i32
    %c0_i32_0 = arith.constant 0 : i32
    %c0_i32_1 = arith.constant 0 : i32
    return %arg0, %c0_i32, %c0_i32_0 : i32, i32, i32
  }
}

module attributes {stable_mosaic.version = 11 : i64} {
  func.func @apply_kernel(%arg0: i32, %arg1: memref<1x18x72xf32, #tpu.memory_space<vmem>>, %arg2: memref<3x72x112xf32, #tpu.memory_space<vmem>>, %arg3: memref<1x112xf32, #tpu.memory_space<vmem>>, %arg4: memref<2x112xf32, #tpu.memory_space<vmem>>, %arg5: memref<1x14x112xf32, #tpu.memory_space<vmem>>) attributes {dimension_semantics = [#tpu.dimension_semantics<parallel>], iteration_bounds = array<i64: 2>, scalar_prefetch = 0 : i64, scratch_operands = 0 : i64, tpu.core_type = #tpu.core_type<tc>, window_params = [{transform_indices = @transform_0, window_bounds = array<i64: 1, 18, 72>}, {pipeline_mode = #tpu.pipeline_mode<synchronous>, transform_indices = @transform_1, window_bounds = array<i64: 3, 72, 112>}, {pipeline_mode = #tpu.pipeline_mode<synchronous>, transform_indices = @transform_2, window_bounds = array<i64: 1, 112>}, {pipeline_mode = #tpu.pipeline_mode<synchronous>, transform_indices = @transform_3, window_bounds = array<i64: 2, 112>}, {transform_indices = @transform_4, window_bounds = array<i64: 1, 14, 112>}]} {
    %cst = arith.constant 0.000000e+00 : f32
    %0 = vector.broadcast %cst : f32 to vector<14x112xf32>
    %c0 = arith.constant 0 : index
    %c0_0 = arith.constant 0 : index
    %c0_1 = arith.constant 0 : index
    %1 = vector.load %arg1[%c0, %c0_0, %c0_1] : memref<1x18x72xf32, #tpu.memory_space<vmem>>, vector<1x14x72xf32>
    %2 = vector.shape_cast %1 : vector<1x14x72xf32> to vector<14x72xf32>
    %c0_2 = arith.constant 0 : index
    %c0_3 = arith.constant 0 : index
    %c0_4 = arith.constant 0 : index
    %3 = vector.load %arg2[%c0_2, %c0_3, %c0_4] : memref<3x72x112xf32, #tpu.memory_space<vmem>>, vector<1x72x112xf32>
    %4 = vector.shape_cast %3 : vector<1x72x112xf32> to vector<72x112xf32>
    %cst_5 = arith.constant dense<0.000000e+00> : vector<14x112xf32>
    %5 = tpu.matmul %2, %4, %cst_5 {dimension_numbers = #tpu.dot_dimension_numbers<[1], [0], [0], [1], [0, 0, 1, 1], [], []>} : vector<14x72xf32>, vector<72x112xf32>, vector<14x112xf32> -> vector<14x112xf32>
    %6 = arith.addf %0, %5 : vector<14x112xf32>
    %c0_6 = arith.constant 0 : index
    %c2 = arith.constant 2 : index
    %c0_7 = arith.constant 0 : index
    %7 = vector.load %arg1[%c0_6, %c2, %c0_7] : memref<1x18x72xf32, #tpu.memory_space<vmem>>, vector<1x14x72xf32>
    %8 = vector.shape_cast %7 : vector<1x14x72xf32> to vector<14x72xf32>
    %c1 = arith.constant 1 : index
    %c0_8 = arith.constant 0 : index
    %c0_9 = arith.constant 0 : index
    %9 = vector.load %arg2[%c1, %c0_8, %c0_9] : memref<3x72x112xf32, #tpu.memory_space<vmem>>, vector<1x72x112xf32>
    %10 = vector.shape_cast %9 : vector<1x72x112xf32> to vector<72x112xf32>
    %cst_10 = arith.constant dense<0.000000e+00> : vector<14x112xf32>
    %11 = tpu.matmul %8, %10, %cst_10 {dimension_numbers = #tpu.dot_dimension_numbers<[1], [0], [0], [1], [0, 0, 1, 1], [], []>} : vector<14x72xf32>, vector<72x112xf32>, vector<14x112xf32> -> vector<14x112xf32>
    %12 = arith.addf %6, %11 : vector<14x112xf32>
    %c0_11 = arith.constant 0 : index
    %c4 = arith.constant 4 : index
    %c0_12 = arith.constant 0 : index
    %13 = vector.load %arg1[%c0_11, %c4, %c0_12] : memref<1x18x72xf32, #tpu.memory_space<vmem>>, vector<1x14x72xf32>
    %14 = vector.shape_cast %13 : vector<1x14x72xf32> to vector<14x72xf32>
    %c2_13 = arith.constant 2 : index
    %c0_14 = arith.constant 0 : index
    %c0_15 = arith.constant 0 : index
    %15 = vector.load %arg2[%c2_13, %c0_14, %c0_15] : memref<3x72x112xf32, #tpu.memory_space<vmem>>, vector<1x72x112xf32>
    %16 = vector.shape_cast %15 : vector<1x72x112xf32> to vector<72x112xf32>
    %cst_16 = arith.constant dense<0.000000e+00> : vector<14x112xf32>
    %17 = tpu.matmul %14, %16, %cst_16 {dimension_numbers = #tpu.dot_dimension_numbers<[1], [0], [0], [1], [0, 0, 1, 1], [], []>} : vector<14x72xf32>, vector<72x112xf32>, vector<14x112xf32> -> vector<14x112xf32>
    %18 = arith.addf %12, %17 : vector<14x112xf32>
    %c0_17 = arith.constant 0 : index
    %c0_18 = arith.constant 0 : index
    %19 = vector.load %arg3[%c0_17, %c0_18] : memref<1x112xf32, #tpu.memory_space<vmem>>, vector<1x112xf32>
    %20 = vector.broadcast %19 : vector<1x112xf32> to vector<14x112xf32>
    %21 = arith.addf %18, %20 : vector<14x112xf32>
    %cst_19 = arith.constant 0.000000e+00 : f32
    %22 = vector.broadcast %cst_19 : f32 to vector<14x112xf32>
    %23 = arith.maximumf %21, %22 : vector<14x112xf32>
    %c0_20 = arith.constant 0 : index
    %c0_21 = arith.constant 0 : index
    %24 = vector.load %arg4[%c0_20, %c0_21] : memref<2x112xf32, #tpu.memory_space<vmem>>, vector<1x112xf32>
    %25 = vector.broadcast %24 : vector<1x112xf32> to vector<14x112xf32>
    %26 = arith.mulf %23, %25 : vector<14x112xf32>
    %c1_22 = arith.constant 1 : index
    %c0_23 = arith.constant 0 : index
    %27 = vector.load %arg4[%c1_22, %c0_23] : memref<2x112xf32, #tpu.memory_space<vmem>>, vector<1x112xf32>
    %28 = vector.broadcast %27 : vector<1x112xf32> to vector<14x112xf32>
    %29 = arith.addf %26, %28 : vector<14x112xf32>
    %c0_24 = arith.constant 0 : index
    %c0_25 = arith.constant 0 : index
    %c0_26 = arith.constant 0 : index
    %30 = vector.load %arg5[%c0_24, %c0_25, %c0_26] : memref<1x14x112xf32, #tpu.memory_space<vmem>>, vector<1x14x112xf32>
    %31 = vector.shape_cast %30 : vector<1x14x112xf32> to vector<14x112xf32>
    %32 = vector.shape_cast %29 : vector<14x112xf32> to vector<1x14x112xf32>
    tpu.vector_store %arg5[%c0_24, %c0_25, %c0_26], %32 {strides = array<i32>} : memref<1x14x112xf32, #tpu.memory_space<vmem>>, vector<1x14x112xf32>,
    return
  }
  func.func @transform_0(%arg0: i32) -> (i32, i32, i32) {
    %c0_i32 = arith.constant 0 : i32
    %c0_i32_0 = arith.constant 0 : i32
    %c0_i32_1 = arith.constant 0 : i32
    return %arg0, %c0_i32, %c0_i32_0 : i32, i32, i32
  }
  func.func @transform_1(%arg0: i32) -> (i32, i32, i32) {
    %c0_i32 = arith.constant 0 : i32
    %c0_i32_0 = arith.constant 0 : i32
    %c0_i32_1 = arith.constant 0 : i32
    %c0_i32_2 = arith.constant 0 : i32
    return %c0_i32, %c0_i32_0, %c0_i32_1 : i32, i32, i32
  }
  func.func @transform_2(%arg0: i32) -> (i32, i32) {
    %c0_i32 = arith.constant 0 : i32
    %c0_i32_0 = arith.constant 0 : i32
    %c0_i32_1 = arith.constant 0 : i32
    return %c0_i32, %c0_i32_0 : i32, i32
  }
  func.func @transform_3(%arg0: i32) -> (i32, i32) {
    %c0_i32 = arith.constant 0 : i32
    %c0_i32_0 = arith.constant 0 : i32
    %c0_i32_1 = arith.constant 0 : i32
    return %c0_i32, %c0_i32_0 : i32, i32
  }
  func.func @transform_4(%arg0: i32) -> (i32, i32, i32) {
    %c0_i32 = arith.constant 0 : i32
    %c0_i32_0 = arith.constant 0 : i32
    %c0_i32_1 = arith.constant 0 : i32
    return %arg0, %c0_i32, %c0_i32_0 : i32, i32, i32
  }
}

</mosaic_0001>

<bundles_post_ra>
// kernel: tile.18
= control target key start
LH: loop header
LB: loop body
LE: loop exit
PB: predicated region body
PF: predicated region fallthrough
CT: control target
= control target key end

     0   :  { %s28_s0 = inlined_call_operand.vmem [shape: f32[8], index: 0, kind: input, shape index: {}]   ;;  %s29_s1 = inlined_call_operand.vmem [shape: f32[14,8], index: 1, kind: output, shape index: {}]  }
   0x1   :  { %v4_v0 = vld [vmem:[%s28_s0] ss:$0 sm:$0xff] }
   0x2   :  { %5 = vst [vmem:[%s29_s1] sm:$0xff] %v4_v0  ;;  %8 = vst [vmem:[%s29_s1 + $0x8] sm:$0xff] %v4_v0 }

// kernel: tile.19
= control target key start
LH: loop header
LB: loop body
LE: loop exit
PB: predicated region body
PF: predicated region fallthrough
CT: control target
= control target key end

     0   :  { %s115_s10 = smov 104   ;;  %s116_s11 = smov 88   ;;  %vm3_vm0 = vcmask 64512   ;;  %vm9_vm1 = vcmask 917312   ;;  %vm15_vm2 = vcmask 851712   ;;  %vm21_vm3 = vcmask 786112   ;;  %s183_s0 = inlined_call_operand.vmem [shape: f32[14,8], index: 0, kind: input, shape index: {}]   ;;  %s184_s1 = inlined_call_operand.vmem [shape: f32[1,112], index: 1, kind: output, shape index: {}]  }
   0x1   :  { %v89_v0 = vld [vmem:[%s183_s0 + $0xd] sm:$0x1]   ;;  %v91_v1 = vld [vmem:[%s183_s0 + $0xb] sm:$0x1]   ;;  %v90_v2 = vld [vmem:[%s183_s0 + $0xc] sm:$0x1]  }
   0x2   :  { %7 = vrot.lane.b32.xlu0 %v89_v0, %s115_s10  ;;  %19 = vrot.lane.b32.xlu1 %v91_v1, %s116_s11  ;;  %v92_v3 = vld [vmem:[%s183_s0 + $0xa] sm:$0x1]   ;;  %s117_s16 = smov 96   ;;  %s118_s17 = smov 80   ;;  %v93_v4 = vld [vmem:[%s183_s0 + $0x9] sm:$0x1]  }
   0x3   :  { %v94_v5 = vld [vmem:[%s183_s0 + $0x8] sm:$0x1]   ;;  %v2_v6 = vld [vmem:[%s183_s0] sm:$0x1]   ;;  %s119_s24 = smov 72   ;;  %s120_s25 = smov 64  }
   0x4   :  { %4 = vst.msk [vmem:[#allocation0] sm:$0x1] %vm3_vm0, %v2_v6   ;;  %v95_v7 = vld [vmem:[%s183_s0 + $0x7] sm:$0x1]   ;;  %v96_v8 = vld [vmem:[%s183_s0 + $0x6] sm:$0x1]  }
   0x5   :  { %s121_s30 = smov 56   ;;  %s122_s2 = smov 48   ;;  %v97_v9 = vld [vmem:[%s183_s0 + $0x5] sm:$0x1]   ;;  %v98_v10 = vld [vmem:[%s183_s0 + $0x4] sm:$0x1]  }
   0x6   :  { %13 = vrot.lane.b32.xlu0 %v90_v2, %s117_s16  ;;  %25 = vrot.lane.b32.xlu1 %v92_v3, %s118_s17  ;;  %s123_s7 = smov 40   ;;  %s124_s8 = smov 32   ;;  %v99_v11 = vld [vmem:[%s183_s0 + $0x3] sm:$0x1]   ;;  %v100_v12 = vld [vmem:[%s183_s0 + $0x2] sm:$0x1]  }
   0x7   :  { %s125_s13 = smov 24   ;;  %s126_s14 = smov 16   ;;  %v101_v13 = vld [vmem:[%s183_s0 + $0x1] sm:$0x1]   ;;  %vm27_vm4 = vcmask 720512   ;;  %vm33_vm5 = vcmask 654912  }
   0x8   :  { %s127_s0 = smov 8   ;;  %vm39_vm6 = vcmask 589312   ;;  %vm45_vm7 = vcmask 523712   ;;  %vm51_vm8 = vcmask 458112   ;;  %vm57_vm9 = vcmask 392512  }
   0x9   :  { %vm63_vm10 = vcmask 326912   ;;  %vm69_vm11 = vcmask 261312   ;;  %vm75_vm12 = vcmask 195712   ;;  %vm81_vm13 = vcmask 130112  }
   0xa   :  { %31 = vrot.lane.b32.xlu0 %v93_v4, %s119_s24  ;;  %37 = vrot.lane.b32.xlu1 %v94_v5, %s120_s25 }
   0xe   :  { %43 = vrot.lane.b32.xlu0 %v95_v7, %s121_s30  ;;  %49 = vrot.lane.b32.xlu1 %v96_v8, %s122_s2 }
  0x12   :  { %55 = vrot.lane.b32.xlu0 %v97_v9, %s123_s7  ;;  %61 = vrot.lane.b32.xlu1 %v98_v10, %s124_s8 }
  0x16   :  { %67 = vrot.lane.b32.xlu0 %v99_v11, %s125_s13  ;;  %73 = vrot.lane.b32.xlu1 %v100_v12, %s126_s14 }
  0x1a   :  { %79 = vrot.lane.b32.xlu0 %v101_v13, %s127_s0 }
  0x74   :  { %v8_v14 = vpop.permute.xlu0 %7   ;;  %v20_v15 = vpop.permute.xlu1 %19  }
  0x75   :  { %10 = vst.msk [vmem:[#allocation0] sm:$0x1] %vm9_vm1, %v8_v14  }
  0x78   :  { %v14_v16 = vpop.permute.xlu0 %13   ;;  %v26_v17 = vpop.permute.xlu1 %25  }
  0x79   :  { %16 = vst.msk [vmem:[#allocation0] sm:$0x1] %vm15_vm2, %v14_v16  }
  0x7a   :  { %22 = vst.msk [vmem:[#allocation0] sm:$0x1] %vm21_vm3, %v20_v15  }
  0x7b   :  { %28 = vst.msk [vmem:[#allocation0] sm:$0x1] %vm27_vm4, %v26_v17  }
  0x7c   :  { %v32_v18 = vpop.permute.xlu0 %31   ;;  %v38_v19 = vpop.permute.xlu1 %37  }
  0x7d   :  { %34 = vst.msk [vmem:[#allocation0] sm:$0x1] %vm33_vm5, %v32_v18  }
  0x7e   :  { %40 = vst.msk [vmem:[#allocation0] sm:$0x1] %vm39_vm6, %v38_v19  }
  0x80   :  { %v44_v20 = vpop.permute.xlu0 %43   ;;  %v50_v21 = vpop.permute.xlu1 %49  }
  0x81   :  { %46 = vst.msk [vmem:[#allocation0] sm:$0x1] %vm45_vm7, %v44_v20  }
  0x82   :  { %52 = vst.msk [vmem:[#allocation0] sm:$0x1] %vm51_vm8, %v50_v21  }
  0x84   :  { %v56_v22 = vpop.permute.xlu0 %55   ;;  %v62_v23 = vpop.permute.xlu1 %61  }
  0x85   :  { %58 = vst.msk [vmem:[#allocation0] sm:$0x1] %vm57_vm9, %v56_v22  }
  0x86   :  { %64 = vst.msk [vmem:[#allocation0] sm:$0x1] %vm63_vm10, %v62_v23  }
  0x88   :  { %v68_v24 = vpop.permute.xlu0 %67   ;;  %v74_v25 = vpop.permute.xlu1 %73  }
  0x89   :  { %70 = vst.msk [vmem:[#allocation0] sm:$0x1] %vm69_vm11, %v68_v24  }
  0x8a   :  { %76 = vst.msk [vmem:[#allocation0] sm:$0x1] %vm75_vm12, %v74_v25  }
  0x8c   :  { %v80_v26 = vpop.permute.xlu0 %79  }
  0x8d   :  { %82 = vst.msk [vmem:[#allocation0] sm:$0x1] %vm81_vm13, %v80_v26  }
  0x94   :  { %v86_v27 = vld [vmem:[#allocation0] sm:$0x1] }
  0x95   :  { %88 = vst [vmem:[%s184_s1] sm:$0x1] %v86_v27 }

// kernel: dilated_conv_block.2
= control target key start
LH: loop header
LB: loop body
LE: loop exit
PB: predicated region body
PF: predicated region fallthrough
CT: control target
= control target key end

     0   :  { %s758_s12 = smov 0   ;;  %s877_s0 = inlined_call_operand.vmem [shape: f32[2,18,72], index: 0, kind: input, shape index: {}]   ;;  %s878_s1 = inlined_call_operand.vmem [shape: f32[3,72,112], index: 1, kind: input, shape index: {}]   ;;  %s879_s2 = inlined_call_operand.vmem [shape: f32[1,112], index: 2, kind: input, shape index: {}]   ;;  %s880_s3 = inlined_call_operand.vmem [shape: f32[2,2,112], index: 3, kind: output, shape index: {}]  }
   0x1 LB: > { %s539_s13 = sadd.s32 4294967295, %s736_s12   ;;  %p543_p0 = scmp.ge.s32.totalorder %s736_s12, 1  ;;  %s736_s12 = sphi %s758_s12, %s13_s12  }
   0x2   : > { %p137_p1 = scmp.lt.s32.totalorder %s736_s12, 3 }
   0x4   : > { %p138_p2 = pnand %p543_p0, %p137_p1 }
   0x5   : > { %v171_v0 = vld [vmem:[%s878_s1] sm:$0xff] (!%p138_p2)  ;;  %v172_v1 = vld [vmem:[%s878_s1 + $0x8] sm:$0xff] (!%p138_p2)  ;;  %v173_v2 = vld [vmem:[%s878_s1 + $0x10] sm:$0xff] (!%p138_p2)  ;;  %p160_p3 = scmp.lt.s32.totalorder (!%p138_p2), %s539_s13, 1  ;;  %vm192_vm0 = vcmask (!%p138_p2), 588800   ;;  %vm463_vm1 = vcmask (!%p138_p2), 914432  }
   0x6   : > { %141 = sbr.rel (%p138_p2) target bundleno = 281 (0x119), region = 32  ;;  %v685_v3 = vpack.c.bf16 (!%p138_p2), %v172_v1, %v171_v0  ;;  %v174_v4 = vld [vmem:[%s878_s1 + $0x18] sm:$0xff] (!%p138_p2)  ;;  %v175_v6 = vld [vmem:[%s878_s1 + $0x20] sm:$0xff] (!%p138_p2)  ;;  %v176_v7 = vld [vmem:[%s878_s1 + $0x28] sm:$0xff] (!%p138_p2)  ;;  %vm461_vm2 = vcmask (!%p138_p2), 916480   ;;  %vm472_vm3 = vcmask (!%p138_p2), 909312  }
   0x7   : > { %v689_v5 = vpack.c.bf16 (!%p138_p2), %v174_v4, %v173_v2  ;;  %v546_v8 = vld [vmem:[%s878_s1 + $0x48] sm:$0xff] (!%p138_p2)  ;;  %v547_v9 = vld [vmem:[%s878_s1 + $0x50] sm:$0xff] (!%p138_p2)  ;;  %v548_v11 = vld [vmem:[%s878_s1 + $0x58] sm:$0xff] (!%p138_p2)  ;;  %v693_v13 = vpack.c.bf16 (!%p138_p2), %v176_v7, %v175_v6 }
   0x8   : > { %686 = vmatprep.subr.bf16.mxu0 (!%p138_p2), %v685_v3  ;;  %v669_v10 = vpack.c.bf16 (!%p138_p2), %v547_v9, %v546_v8  ;;  %v549_v12 = vld [vmem:[%s878_s1 + $0x60] sm:$0xff] (!%p138_p2)  ;;  %v550_v15 = vld [vmem:[%s878_s1 + $0x68] sm:$0xff] (!%p138_p2)  ;;  %v177_v16 = vld [vmem:[%s878_s1 + $0x30] sm:$0xff] (!%p138_p2) }
   0x9   : > { %688 = vmatpush3.bf16.msra.mxu0 (!%p138_p2), %v685_v3  ;;  %v673_v14 = vpack.c.bf16 (!%p138_p2), %v549_v12, %v548_v11  ;;  %v178_v17 = vld [vmem:[%s878_s1 + $0x38] sm:$0xff] (!%p138_p2)  ;;  %v551_v18 = vld [vmem:[%s878_s1 + $0x70] sm:$0xff] (!%p138_p2)  ;;  %v553_v23 = vld [vmem:[%s878_s1 + $0x80] sm:$0xff] (!%p138_p2) }
   0xa   : > { %690 = vmatprep.subr.bf16.mxu0 (!%p138_p2), %v689_v5  ;;  %670 = vmatprep.subr.bf16.mxu1 (!%p138_p2), %v669_v10  ;;  %v677_v20 = vpack.c.bf16 (!%p138_p2), %v551_v18, %v550_v15  ;;  %v697_v21 = vpack.c.bf16 (!%p138_p2), %v178_v17, %v177_v16  ;;  %v552_v22 = vld [vmem:[%s878_s1 + $0x78] sm:$0xff] (!%p138_p2)  ;;  %v179_v26 = vld [vmem:[%s878_s1 + $0x40] sm:$0xff] (!%p138_p2)  ;;  %v559_v27 = vld [vmem:[%s878_s1 + $0x90] sm:$0xff] (!%p138_p2) }
   0xb   : > { %672 = vmatpush3.bf16.msra.mxu1 (!%p138_p2), %v669_v10  ;;  %v681_v25 = vpack.c.bf16 (!%p138_p2), %v553_v23, %v552_v22  ;;  %v560_v28 = vld [vmem:[%s878_s1 + $0x98] sm:$0xff] (!%p138_p2)  ;;  %v561_v29 = vld [vmem:[%s878_s1 + $0xa0] sm:$0xff] (!%p138_p2)  ;;  %v562_v30 = vld [vmem:[%s878_s1 + $0xa8] sm:$0xff] (!%p138_p2) }
   0xc   : > { %674 = vmatprep.subr.bf16.mxu1 (!%p138_p2), %v673_v14  ;;  %v701_v31 = vpack.c.bf16 (!%p138_p2), %v560_v28, %v559_v27  ;;  %v554_v32 = vld [vmem:[%s878_s1 + $0x88] sm:$0xff] (!%p138_p2)  ;;  %v705_v34 = vpack.c.bf16 (!%p138_p2), %v562_v30, %v561_v29  ;;  %v563_v36 = vld [vmem:[%s878_s1 + $0xb0] sm:$0xff] (!%p138_p2)  ;;  %v564_v37 = vld [vmem:[%s878_s1 + $0xb8] sm:$0xff] (!%p138_p2) }
   0xd   : > { %s882_s13 = smov (!%p160_p3, %s539_s13), 1  ;;  %692 = vmatpush3.bf16.msra.mxu0 %v689_v5  ;;  %v709_v39 = vpack.c.bf16 %v564_v37, %v563_v36  ;;  %v565_v40 = vld [vmem:[%s878_s1 + $0xc0] sm:$0xff]  ;;  %v566_v41 = vld [vmem:[%s878_s1 + $0xc8] sm:$0xff]  ;;  %v567_v43 = vld [vmem:[%s878_s1 + $0xd0] sm:$0xff] }
   0xe   : > { %s721_s30 = smul.u32 24, %s882_s13  ;;  %694 = vmatprep.subr.bf16.mxu0 %v693_v13  ;;  %v713_v42 = vpack.c.bf16 %v566_v41, %v565_v40  ;;  %v570_v48 = vld [vmem:[%s879_s2] ss:$0 sm:$0xff] }
   0xf   : > { %676 = vmatpush3.bf16.msra.mxu1 %v673_v14 }
  0x10   : > { %s811_s18 = scalar_lea.vmem %s877_s0, %s721_s30  ;;  %678 = vmatprep.subr.bf16.mxu1 %v677_v20 }
  0x11   : > { %v169_v19 = vld [vmem:[%s811_s18] sm:$0xff]  ;;  %696 = vmatpush3.bf16.msra.mxu0 %v693_v13  ;;  %v170_v33 = vld [vmem:[%s811_s18 + $0x8] sm:$0x3f] }
  0x12   : > { %645 = vmatprep.mubr.msk.f32.mxu0 %vm192_vm0, %v169_v19  ;;  %v180_v24 = vld [vmem:[%s811_s18 + $0x2] sm:$0xff]  ;;  %698 = vmatprep.subr.bf16.mxu0 %v697_v21  ;;  %v181_v38 = vld [vmem:[%s811_s18 + $0xa] sm:$0x3f] }
  0x13   : > { %624 = vmatprep.mubr.msk.f32.mxu1 %vm192_vm0, %v180_v24  ;;  %680 = vmatpush3.bf16.msra.mxu1 %v677_v20  ;;  %v355_v35 = vld [vmem:[%s811_s18 + $0x4] sm:$0xff]  ;;  %v356_v44 = vld [vmem:[%s811_s18 + $0xc] sm:$0x3f]  ;;  %s545_s18 = sshll.u32 %s882_s13, 1 }
  0x14   : > { %682 = vmatprep.subr.bf16.mxu1 %v681_v25  ;;  %s168_s27 = scalar_lea.vmem %s880_s3, %s545_s18 }
  0x15   : > { %700 = vmatpush3.bf16.msra.mxu0 %v697_v21 }
  0x16   : > { %643 = vmatprep.subr.mxu0 %v179_v26 }
  0x17   : > { %684 = vmatpush3.bf16.msra.mxu1 %v681_v25 }
  0x18   : > { %622 = vmatprep.subr.mxu1 %v554_v32 }
  0x19   : > { %644 = vmatpush3.msra.mxu0 %v179_v26 }
  0x1a   : > { %702 = vmatprep.subr.bf16.mxu0 %v701_v31  ;;  %646 = vmatmul.mubr.msk.f32.vlgmr.msra.gmra.mrb[0].mxu0 %vm192_vm0, %v170_v33 }
  0x1b   : > { %704 = vmatpush3.bf16.msra.mxu0 %v701_v31  ;;  %666 = vmatprep.mubr.msk.f32.mxu0 %vm192_vm0, %v355_v35 }
  0x1c   : > { %706 = vmatprep.subr.bf16.mxu0 %v705_v34  ;;  %623 = vmatpush3.msra.mxu1 %v554_v32 }
  0x1d   : > { %625 = vmatmul.mubr.msk.f32.vlgmr.msra.gmra.mrb[0].mxu1 %vm192_vm0, %v181_v38 }
  0x1f   : > { %708 = vmatpush3.bf16.msra.mxu0 %v705_v34 }
  0x20   : > { %710 = vmatprep.subr.bf16.mxu0 %v709_v39 }
  0x23   : > { %712 = vmatpush3.bf16.msra.mxu0 %v709_v39 }
  0x24   : > { %714 = vmatprep.subr.bf16.mxu0 %v713_v42 }
  0x27   : > { %716 = vmatpush3.bf16.msra.mxu0 %v713_v42 }
  0x28   : > { %664 = vmatprep.subr.mxu0 %v567_v43 }
  0x2b   : > { %665 = vmatpush3.msra.mxu0 %v567_v43 }
  0x2c   : > { %667 = vmatmul.mubr.msk.f32.vlgmr.msra.gmra.mrb[0].mxu0 %vm192_vm0, %v356_v44 }
  0xf0   : > { %v626_v45 = vpop.f32.mrb[0].mxu1 }
  0xf1   : > { %v265_v46 = vpop.f32.mrb[1].mxu1 }
  0xff   : > { %v668_v47 = vpop.f32.mrb[0].mxu0 }
 0x100   : > { %v717_v49 = vadd.f32 %v668_v47, %v626_v45  ;;  %v439_v50 = vpop.f32.mrb[1].mxu0 }
 0x101   : > { %v718_v51 = vadd.f32 %v439_v50, %v265_v46 }
 0x102   : > { %v458_v52 = vadd.f32 %v717_v49, %v570_v48 }
 0x103   : > { %v457_v53 = vadd.f32 %v718_v51, %v570_v48 }
 0x104   : > { %v460_v54 = vmax.f32 %v458_v52, 0.0 }
 0x105   : > { %v459_v55 = vmax.f32 %v457_v53, 0.0 }
 0x106   : > { %v464_v56 = vsel %vm463_vm1, %v460_v54, 0.0  ;;  %v475_v57 = vmul.f32 %v460_v54, %v460_v54 }
 0x107   : > { %v462_v58 = vsel %vm461_vm2, %v459_v55, 0.0  ;;  %v474_v59 = vmul.f32 %v459_v55, %v459_v55 }
 0x108   : > { %v477_v60 = vsel %vm463_vm1, %v475_v57, 0.0  ;;  %v465_v61 = vadd.f32 %v464_v56, %v462_v58 }
 0x109   : > { %v476_v62 = vsel %vm461_vm2, %v474_v59, 0.0 }
 0x10a   : > { %v466_v63 = vrot.slane %v465_v61, 4  ;;  %v478_v0 = vadd.f32 %v477_v60, %v476_v62 }
 0x10c   : > { %v467_v1 = vadd.f32 %v466_v63, %v465_v61  ;;  %v479_v2 = vrot.slane %v478_v0, 4 }
 0x10e   : > { %v468_v3 = vrot.slane %v467_v1, 2  ;;  %v480_v4 = vadd.f32 %v479_v2, %v478_v0 }
 0x110   : > { %v469_v5 = vadd.f32 %v468_v3, %v467_v1  ;;  %v481_v6 = vrot.slane %v480_v4, 2 }
 0x112   : > { %v470_v7 = vrot.slane %v469_v5, 1  ;;  %v482_v8 = vadd.f32 %v481_v6, %v480_v4 }
 0x114   : > { %v471_v9 = vadd.f32 %v470_v7, %v469_v5  ;;  %v483_v10 = vrot.slane %v482_v8, 1 }
 0x116   : > { %473 = vst.msk [vmem:[%s168_s27] sm:$0x1] %vm472_vm3, %v471_v9  ;;  %v484_v11 = vadd.f32 %v483_v10, %v482_v8 }
 0x118   : > { %485 = vst.msk [vmem:[%s168_s27 + $0x1] sm:$0x1] %vm472_vm3, %v484_v11 }
 0x119 PF: > { %s13_s12 = sadd.s32 1, %s736_s12  }
 0x11a   : > { %p10_p4 = scmp.ge.s32.totalorder %s13_s12, 4  }
 0x11c   :  { %12 = sbr.rel (!%p10_p4) target bundleno = 1 (0x1), region = 64 }

// kernel: dilated_conv_block.3
= control target key start
LH: loop header
LB: loop body
LE: loop exit
PB: predicated region body
PF: predicated region fallthrough
CT: control target
= control target key end

     0   :  { %s791_s15 = smov 0   ;;  %s916_s0 = inlined_call_operand.vmem [shape: f32[2,18,72], index: 0, kind: input, shape index: {}]   ;;  %s917_s1 = inlined_call_operand.vmem [shape: f32[3,72,112], index: 1, kind: input, shape index: {}]   ;;  %s918_s2 = inlined_call_operand.vmem [shape: f32[1,112], index: 2, kind: input, shape index: {}]   ;;  %s919_s3 = inlined_call_operand.vmem [shape: f32[2,112], index: 3, kind: input, shape index: {}]   ;;  %s920_s4 = inlined_call_operand.vmem [shape: f32[2,14,112], index: 4, kind: output, shape index: {}]  }
   0x1 LB: > { %s563_s16 = sadd.s32 4294967295, %s764_s15   ;;  %p567_p0 = scmp.ge.s32.totalorder %s764_s15, 1  ;;  %s764_s15 = sphi %s791_s15, %s14_s15  }
   0x2   : > { %p162_p1 = scmp.lt.s32.totalorder %s764_s15, 3 }
   0x4   : > { %p163_p2 = pnand %p567_p0, %p162_p1 }
   0x5   : > { %v200_v0 = vld [vmem:[%s917_s1] sm:$0xff] (!%p163_p2)  ;;  %v201_v1 = vld [vmem:[%s917_s1 + $0x8] sm:$0xff] (!%p163_p2)  ;;  %v202_v2 = vld [vmem:[%s917_s1 + $0x10] sm:$0xff] (!%p163_p2)  ;;  %p188_p3 = scmp.lt.s32.totalorder (!%p163_p2), %s563_s16, 1  ;;  %vm221_vm0 = vcmask (!%p163_p2), 588800   ;;  %vm506_vm1 = vcmask (!%p163_p2), 914432  }
   0x6   : > { %166 = sbr.rel (%p163_p2) target bundleno = 268 (0x10c), region = 36  ;;  %v713_v3 = vpack.c.bf16 (!%p163_p2), %v201_v1, %v200_v0  ;;  %v203_v4 = vld [vmem:[%s917_s1 + $0x18] sm:$0xff] (!%p163_p2)  ;;  %v204_v6 = vld [vmem:[%s917_s1 + $0x20] sm:$0xff] (!%p163_p2)  ;;  %v205_v7 = vld [vmem:[%s917_s1 + $0x28] sm:$0xff] (!%p163_p2)  ;;  %vm504_vm2 = vcmask (!%p163_p2), 916480  }
   0x7   : > { %v717_v5 = vpack.c.bf16 (!%p163_p2), %v203_v4, %v202_v2  ;;  %v571_v8 = vld [vmem:[%s917_s1 + $0x48] sm:$0xff] (!%p163_p2)  ;;  %v572_v9 = vld [vmem:[%s917_s1 + $0x50] sm:$0xff] (!%p163_p2)  ;;  %v573_v11 = vld [vmem:[%s917_s1 + $0x58] sm:$0xff] (!%p163_p2)  ;;  %v721_v13 = vpack.c.bf16 (!%p163_p2), %v205_v7, %v204_v6 }
   0x8   : > { %714 = vmatprep.subr.bf16.mxu0 (!%p163_p2), %v713_v3  ;;  %v697_v10 = vpack.c.bf16 (!%p163_p2), %v572_v9, %v571_v8  ;;  %v574_v12 = vld [vmem:[%s917_s1 + $0x60] sm:$0xff] (!%p163_p2)  ;;  %v575_v15 = vld [vmem:[%s917_s1 + $0x68] sm:$0xff] (!%p163_p2)  ;;  %v206_v16 = vld [vmem:[%s917_s1 + $0x30] sm:$0xff] (!%p163_p2) }
   0x9   : > { %716 = vmatpush3.bf16.msra.mxu0 (!%p163_p2), %v713_v3  ;;  %v701_v14 = vpack.c.bf16 (!%p163_p2), %v574_v12, %v573_v11  ;;  %v207_v17 = vld [vmem:[%s917_s1 + $0x38] sm:$0xff] (!%p163_p2)  ;;  %v576_v18 = vld [vmem:[%s917_s1 + $0x70] sm:$0xff] (!%p163_p2)  ;;  %v578_v23 = vld [vmem:[%s917_s1 + $0x80] sm:$0xff] (!%p163_p2) }
   0xa   : > { %718 = vmatprep.subr.bf16.mxu0 (!%p163_p2), %v717_v5  ;;  %698 = vmatprep.subr.bf16.mxu1 (!%p163_p2), %v697_v10  ;;  %v705_v20 = vpack.c.bf16 (!%p163_p2), %v576_v18, %v575_v15  ;;  %v725_v21 = vpack.c.bf16 (!%p163_p2), %v207_v17, %v206_v16  ;;  %v577_v22 = vld [vmem:[%s917_s1 + $0x78] sm:$0xff] (!%p163_p2)  ;;  %v208_v26 = vld [vmem:[%s917_s1 + $0x40] sm:$0xff] (!%p163_p2)  ;;  %v584_v27 = vld [vmem:[%s917_s1 + $0x90] sm:$0xff] (!%p163_p2) }
   0xb   : > { %700 = vmatpush3.bf16.msra.mxu1 (!%p163_p2), %v697_v10  ;;  %v709_v25 = vpack.c.bf16 (!%p163_p2), %v578_v23, %v577_v22  ;;  %v585_v28 = vld [vmem:[%s917_s1 + $0x98] sm:$0xff] (!%p163_p2)  ;;  %v586_v29 = vld [vmem:[%s917_s1 + $0xa0] sm:$0xff] (!%p163_p2)  ;;  %v587_v30 = vld [vmem:[%s917_s1 + $0xa8] sm:$0xff] (!%p163_p2) }
   0xc   : > { %702 = vmatprep.subr.bf16.mxu1 (!%p163_p2), %v701_v14  ;;  %v729_v31 = vpack.c.bf16 (!%p163_p2), %v585_v28, %v584_v27  ;;  %v579_v32 = vld [vmem:[%s917_s1 + $0x88] sm:$0xff] (!%p163_p2)  ;;  %v733_v34 = vpack.c.bf16 (!%p163_p2), %v587_v30, %v586_v29  ;;  %v588_v36 = vld [vmem:[%s917_s1 + $0xb0] sm:$0xff] (!%p163_p2)  ;;  %v589_v37 = vld [vmem:[%s917_s1 + $0xb8] sm:$0xff] (!%p163_p2) }
   0xd   : > { %s922_s16 = smov (!%p188_p3, %s563_s16), 1  ;;  %720 = vmatpush3.bf16.msra.mxu0 %v717_v5  ;;  %v737_v39 = vpack.c.bf16 %v589_v37, %v588_v36  ;;  %v590_v40 = vld [vmem:[%s917_s1 + $0xc0] sm:$0xff]  ;;  %v591_v41 = vld [vmem:[%s917_s1 + $0xc8] sm:$0xff]  ;;  %v592_v43 = vld [vmem:[%s917_s1 + $0xd0] sm:$0xff] }
   0xe   : > { %s749_s7 = smul.u32 24, %s922_s16  ;;  %722 = vmatprep.subr.bf16.mxu0 %v721_v13  ;;  %v741_v42 = vpack.c.bf16 %v591_v41, %v590_v40  ;;  %v595_v48 = vld [vmem:[%s918_s2] ss:$0 sm:$0xff]  ;;  %v597_v56 = vld [vmem:[%s919_s3 + $0x1] ss:$0 sm:$0xff] }
   0xf   : > { %704 = vmatpush3.bf16.msra.mxu1 %v701_v14  ;;  %v596_v53 = vld [vmem:[%s919_s3] ss:$0 sm:$0xff] }
  0x10   : > { %s844_s22 = scalar_lea.vmem %s916_s0, %s749_s7  ;;  %706 = vmatprep.subr.bf16.mxu1 %v705_v20 }
  0x11   : > { %v198_v19 = vld [vmem:[%s844_s22] sm:$0xff]  ;;  %724 = vmatpush3.bf16.msra.mxu0 %v721_v13  ;;  %v199_v33 = vld [vmem:[%s844_s22 + $0x8] sm:$0x3f] }
  0x12   : > { %673 = vmatprep.mubr.msk.f32.mxu0 %vm221_vm0, %v198_v19  ;;  %v209_v24 = vld [vmem:[%s844_s22 + $0x2] sm:$0xff]  ;;  %726 = vmatprep.subr.bf16.mxu0 %v725_v21  ;;  %v210_v38 = vld [vmem:[%s844_s22 + $0xa] sm:$0x3f] }
  0x13   : > { %652 = vmatprep.mubr.msk.f32.mxu1 %vm221_vm0, %v209_v24  ;;  %708 = vmatpush3.bf16.msra.mxu1 %v705_v20  ;;  %v384_v35 = vld [vmem:[%s844_s22 + $0x4] sm:$0xff]  ;;  %v385_v44 = vld [vmem:[%s844_s22 + $0xc] sm:$0x3f]  ;;  %s600_s22 = sshll.u32 %s922_s16, 4 }
  0x14   : > { %710 = vmatprep.subr.bf16.mxu1 %v709_v25  ;;  %s197_s10 = scalar_lea.vmem %s920_s4, %s600_s22 }
  0x15   : > { %728 = vmatpush3.bf16.msra.mxu0 %v725_v21 }
  0x16   : > { %671 = vmatprep.subr.mxu0 %v208_v26 }
  0x17   : > { %712 = vmatpush3.bf16.msra.mxu1 %v709_v25 }
  0x18   : > { %650 = vmatprep.subr.mxu1 %v579_v32 }
  0x19   : > { %672 = vmatpush3.msra.mxu0 %v208_v26 }
  0x1a   : > { %730 = vmatprep.subr.bf16.mxu0 %v729_v31  ;;  %674 = vmatmul.mubr.msk.f32.vlgmr.msra.gmra.mrb[0].mxu0 %vm221_vm0, %v199_v33 }
  0x1b   : > { %732 = vmatpush3.bf16.msra.mxu0 %v729_v31  ;;  %694 = vmatprep.mubr.msk.f32.mxu0 %vm221_vm0, %v384_v35 }
  0x1c   : > { %734 = vmatprep.subr.bf16.mxu0 %v733_v34  ;;  %651 = vmatpush3.msra.mxu1 %v579_v32 }
  0x1d   : > { %653 = vmatmul.mubr.msk.f32.vlgmr.msra.gmra.mrb[0].mxu1 %vm221_vm0, %v210_v38 }
  0x1f   : > { %736 = vmatpush3.bf16.msra.mxu0 %v733_v34 }
  0x20   : > { %738 = vmatprep.subr.bf16.mxu0 %v737_v39 }
  0x23   : > { %740 = vmatpush3.bf16.msra.mxu0 %v737_v39 }
  0x24   : > { %742 = vmatprep.subr.bf16.mxu0 %v741_v42 }
  0x27   : > { %744 = vmatpush3.bf16.msra.mxu0 %v741_v42 }
  0x28   : > { %692 = vmatprep.subr.mxu0 %v592_v43 }
  0x2b   : > { %693 = vmatpush3.msra.mxu0 %v592_v43 }
  0x2c   : > { %695 = vmatmul.mubr.msk.f32.vlgmr.msra.gmra.mrb[0].mxu0 %vm221_vm0, %v385_v44 }
  0xf0   : > { %v654_v45 = vpop.f32.mrb[0].mxu1 }
  0xf1   : > { %v294_v46 = vpop.f32.mrb[1].mxu1 }
  0xff   : > { %v696_v47 = vpop.f32.mrb[0].mxu0 }
 0x100   : > { %v745_v49 = vadd.f32 %v696_v47, %v654_v45  ;;  %v468_v50 = vpop.f32.mrb[1].mxu0 }
 0x101   : > { %v746_v51 = vadd.f32 %v468_v50, %v294_v46 }
 0x102   : > { %v487_v52 = vadd.f32 %v745_v49, %v595_v48 }
 0x103   : > { %v486_v54 = vadd.f32 %v746_v51, %v595_v48 }
 0x104   : > { %v489_v55 = vmax.f32 %v487_v52, 0.0 }
 0x105   : > { %v488_v57 = vmax.f32 %v486_v54, 0.0 }
 0x106   : > { %v496_v58 = vmul.f32 %v596_v53, %v489_v55 }
 0x107   : > { %v495_v59 = vmul.f32 %v596_v53, %v488_v57 }
 0x108   : > { %v503_v60 = vadd.f32 %v597_v56, %v496_v58 }
 0x109   : > { %v502_v61 = vadd.f32 %v597_v56, %v495_v59 }
 0x10a   : > { %507 = vst.msk [vmem:[%s197_s10 + $0x8] sm:$0x3f] %vm506_vm1, %v503_v60 }
 0x10b   : > { %505 = vst.msk [vmem:[%s197_s10] sm:$0xff] %vm504_vm2, %v502_v61 }
 0x10c PF: > { %s14_s15 = sadd.s32 1, %s764_s15  }
 0x10d   : > { %p11_p4 = scmp.ge.s32.totalorder %s14_s15, 4  }
 0x10f   :  { %13 = sbr.rel (!%p11_p4) target bundleno = 1 (0x1), region = 68 }

</bundles_post_ra>
